<compile_context>
chip_gen: v6e
topology: v6e:2x2x1
jax: 0.10.0
libtpu: 0.0.40
codegen_flags: <defaults>
</compile_context>

<pallas_src>
import math

import jax
import jax.numpy as jnp
from jax.experimental import pallas as pl
from jax.experimental.pallas import tpu as pltpu


def _mlp_kernel(x_ref, w1_ref, b1_ref, w2_ref, b2_ref, w3_ref, b3_ref, o_ref):
    # x_ref: (TB, D_in) in the MXU dtype (bf16 by default); biases are f32.
    x = x_ref[...]
    h1 = jnp.dot(x, w1_ref[...], preferred_element_type=jnp.float32) + b1_ref[...]
    h1 = jnp.tanh(h1)                                                # f32, (TB, H)
    h2 = (
        jnp.dot(h1.astype(w2_ref.dtype), w2_ref[...],
                preferred_element_type=jnp.float32)
        + b2_ref[...]
    )
    h2 = jnp.tanh(h2)                                                # f32, (TB, H)
    y = (
        jnp.dot(h2.astype(w3_ref.dtype), w3_ref[...],
                preferred_element_type=jnp.float32)
        + b3_ref[...]
    )                                                                # (TB, D_out)
    # Store transposed so the (large, 128-multiple) batch tile is on lanes.
    o_ref[...] = y.T.astype(o_ref.dtype)                             # (D_out, TB)


def mlp_forward(x, w1, b1, w2, b2, w3, b3, *, batch_tile=256, use_bf16=True):
    """x: (B, D_in) f32; w*: (in, out) pre-transposed f32; b*: (1, out) f32."""
    B, d_in = x.shape
    h = w1.shape[1]
    d_out = w3.shape[1]

    # Pad the batch to a multiple of the tile (>=128 so the transposed output
    # store is lane-dense; multiple of 8 for sublanes).
    n_tiles = pl.cdiv(B, batch_tile)
    B_pad = n_tiles * batch_tile
    if B_pad != B:
        x = jnp.pad(x, ((0, B_pad - B), (0, 0)))

    mxu_dtype = jnp.bfloat16 if use_bf16 else x.dtype
    x_in = x.astype(mxu_dtype)
    w1_in = w1.astype(mxu_dtype)
    w2_in = w2.astype(mxu_dtype)
    w3_in = w3.astype(mxu_dtype)

    out_t = pl.pallas_call(
        _mlp_kernel,
        out_shape=jax.ShapeDtypeStruct((d_out, B_pad), jnp.float32),
        grid=(n_tiles,),
        in_specs=[
            pl.BlockSpec((batch_tile, d_in), lambda i: (i, 0)),  # x: advances with grid
            pl.BlockSpec((d_in, h), lambda i: (0, 0)),           # w1: VMEM-resident
            pl.BlockSpec((1, h), lambda i: (0, 0)),              # b1
            pl.BlockSpec((h, h), lambda i: (0, 0)),              # w2
            pl.BlockSpec((1, h), lambda i: (0, 0)),              # b2
            pl.BlockSpec((h, d_out), lambda i: (0, 0)),          # w3
            pl.BlockSpec((1, d_out), lambda i: (0, 0)),          # b3
        ],
        out_specs=pl.BlockSpec((d_out, batch_tile), lambda i: (0, i)),
        compiler_params=pltpu.CompilerParams(
            dimension_semantics=("parallel",),  # v7x: split grid across 2 TCs
        ),
    )(x_in, w1_in, b1, w2_in, b2, w3_in, b3)

    # Wrapper-side layout plumbing: back to (B, D_out), drop batch padding.
    return out_t.T[:B]


def _reference_forward(x, w1, b1, w2, b2, w3, b3, dtype):
    """Pure-JAX reference with the same dtype discipline as the kernel."""
    h1 = jnp.tanh(
        jnp.dot(x.astype(dtype), w1.astype(dtype),
                preferred_element_type=jnp.float32) + b1
    )
    h2 = jnp.tanh(
        jnp.dot(h1.astype(dtype), w2.astype(dtype),
                preferred_element_type=jnp.float32) + b2
    )
    return (
        jnp.dot(h2.astype(dtype), w3.astype(dtype),
                preferred_element_type=jnp.float32) + b3
    )


def _xavier_uniform(key, fan_in, fan_out):
    # torch.nn.init.xavier_uniform_ on a (out, in) weight; emitted as (in, out).
    bound = math.sqrt(6.0 / (fan_in + fan_out))
    return jax.random.uniform(
        key, (fan_in, fan_out), jnp.float32, minval=-bound, maxval=bound
    )


def _linear_bias(key, fan_in, fan_out):
    # torch default Linear bias init: U(-1/sqrt(fan_in), 1/sqrt(fan_in))
    bound = 1.0 / math.sqrt(fan_in)
    return jax.random.uniform(
        key, (1, fan_out), jnp.float32, minval=-bound, maxval=bound
    )


if __name__ == "__main__":
    # Shapes implied by the module: input_dim=16, hidden=32, output_dim=8.
    input_dim, hidden, output_dim = 16, 32, 8

    root = jax.random.PRNGKey(0)
    kx, k1, k2, k3, kb1, kb2, kb3 = jax.random.split(root, 7)

    w1 = _xavier_uniform(k1, input_dim, hidden)
    b1 = _linear_bias(kb1, input_dim, hidden)
    w2 = _xavier_uniform(k2, hidden, hidden)
    b2 = _linear_bias(kb2, hidden, hidden)
    w3 = _xavier_uniform(k3, hidden, output_dim)
    b3 = _linear_bias(kb3, hidden, output_dim)

    ok = True
    # Small batch (module-scale) + a multi-tile batch to exercise the grid.
    for batch in (8, 512):
        kb = jax.random.fold_in(kx, batch)
        x = jax.random.normal(kb, (batch, input_dim), jnp.float32)

        out = mlp_forward(x, w1, b1, w2, b2, w3, b3)
        out = jax.block_until_ready(out)

        # Reference with matching bf16-input / f32-accumulate discipline.
        ref_bf16 = _reference_forward(x, w1, b1, w2, b2, w3, b3, jnp.bfloat16)
        # Full-f32 reference (PyTorch semantics) with bf16-rounding tolerance.
        ref_f32 = _reference_forward(x, w1, b1, w2, b2, w3, b3, jnp.float32)

        ok &= out.shape == (batch, output_dim)
        ok &= bool(jnp.allclose(out, ref_bf16, atol=1e-3, rtol=1e-3))
        ok &= bool(jnp.allclose(out, ref_f32, atol=5e-2, rtol=5e-2))

    assert ok
    print("KERNEL_OK")
</pallas_src>

<mosaic_0001>
module attributes {stable_mosaic.version = 11 : i64} {
  func.func @_mlp_kernel(%arg0: i32, %arg1: memref<256x16xbf16, #tpu.memory_space<vmem>>, %arg2: memref<16x32xbf16, #tpu.memory_space<vmem>>, %arg3: memref<1x32xf32, #tpu.memory_space<vmem>>, %arg4: memref<32x32xbf16, #tpu.memory_space<vmem>>, %arg5: memref<1x32xf32, #tpu.memory_space<vmem>>, %arg6: memref<32x8xbf16, #tpu.memory_space<vmem>>, %arg7: memref<1x8xf32, #tpu.memory_space<vmem>>, %arg8: memref<8x256xf32, #tpu.memory_space<vmem>>) attributes {dimension_semantics = [#tpu.dimension_semantics<parallel>], iteration_bounds = array<i64: 1>, scalar_prefetch = 0 : i64, scratch_operands = 0 : i64, tpu.core_type = #tpu.core_type<tc>, window_params = [{transform_indices = @transform_0, window_bounds = array<i64: 256, 16>}, {pipeline_mode = #tpu.pipeline_mode<synchronous>, transform_indices = @transform_1, window_bounds = array<i64: 16, 32>}, {pipeline_mode = #tpu.pipeline_mode<synchronous>, transform_indices = @transform_2, window_bounds = array<i64: 1, 32>}, {pipeline_mode = #tpu.pipeline_mode<synchronous>, transform_indices = @transform_3, window_bounds = array<i64: 32, 32>}, {pipeline_mode = #tpu.pipeline_mode<synchronous>, transform_indices = @transform_4, window_bounds = array<i64: 1, 32>}, {pipeline_mode = #tpu.pipeline_mode<synchronous>, transform_indices = @transform_5, window_bounds = array<i64: 32, 8>}, {pipeline_mode = #tpu.pipeline_mode<synchronous>, transform_indices = @transform_6, window_bounds = array<i64: 1, 8>}, {transform_indices = @transform_7, window_bounds = array<i64: 8, 256>}]} {
    %c0 = arith.constant 0 : index
    %c0_0 = arith.constant 0 : index
    %0 = vector.load %arg1[%c0, %c0_0] : memref<256x16xbf16, #tpu.memory_space<vmem>>, vector<256x16xbf16>
    %c0_1 = arith.constant 0 : index
    %c0_2 = arith.constant 0 : index
    %1 = vector.load %arg2[%c0_1, %c0_2] : memref<16x32xbf16, #tpu.memory_space<vmem>>, vector<16x32xbf16>
    %cst = arith.constant dense<0.000000e+00> : vector<256x32xf32>
    %2 = tpu.matmul %0, %1, %cst {dimension_numbers = #tpu.dot_dimension_numbers<[1], [0], [0], [1], [0, 0, 1, 1], [], []>} : vector<256x16xbf16>, vector<16x32xbf16>, vector<256x32xf32> -> vector<256x32xf32>
    %c0_3 = arith.constant 0 : index
    %c0_4 = arith.constant 0 : index
    %3 = vector.load %arg3[%c0_3, %c0_4] : memref<1x32xf32, #tpu.memory_space<vmem>>, vector<1x32xf32>
    %4 = vector.broadcast %3 : vector<1x32xf32> to vector<256x32xf32>
    %5 = arith.addf %2, %4 : vector<256x32xf32>
    %6 = math.tanh %5 : vector<256x32xf32>
    %7 = arith.truncf %6 : vector<256x32xf32> to vector<256x32xbf16>
    %c0_5 = arith.constant 0 : index
    %c0_6 = arith.constant 0 : index
    %8 = vector.load %arg4[%c0_5, %c0_6] : memref<32x32xbf16, #tpu.memory_space<vmem>>, vector<32x32xbf16>
    %cst_7 = arith.constant dense<0.000000e+00> : vector<256x32xf32>
    %9 = tpu.matmul %7, %8, %cst_7 {dimension_numbers = #tpu.dot_dimension_numbers<[1], [0], [0], [1], [0, 0, 1, 1], [], []>} : vector<256x32xbf16>, vector<32x32xbf16>, vector<256x32xf32> -> vector<256x32xf32>
    %c0_8 = arith.constant 0 : index
    %c0_9 = arith.constant 0 : index
    %10 = vector.load %arg5[%c0_8, %c0_9] : memref<1x32xf32, #tpu.memory_space<vmem>>, vector<1x32xf32>
    %11 = vector.broadcast %10 : vector<1x32xf32> to vector<256x32xf32>
    %12 = arith.addf %9, %11 : vector<256x32xf32>
    %13 = math.tanh %12 : vector<256x32xf32>
    %14 = arith.truncf %13 : vector<256x32xf32> to vector<256x32xbf16>
    %c0_10 = arith.constant 0 : index
    %c0_11 = arith.constant 0 : index
    %15 = vector.load %arg6[%c0_10, %c0_11] : memref<32x8xbf16, #tpu.memory_space<vmem>>, vector<32x8xbf16>
    %cst_12 = arith.constant dense<0.000000e+00> : vector<256x8xf32>
    %16 = tpu.matmul %14, %15, %cst_12 {dimension_numbers = #tpu.dot_dimension_numbers<[1], [0], [0], [1], [0, 0, 1, 1], [], []>} : vector<256x32xbf16>, vector<32x8xbf16>, vector<256x8xf32> -> vector<256x8xf32>
    %c0_13 = arith.constant 0 : index
    %c0_14 = arith.constant 0 : index
    %17 = vector.load %arg7[%c0_13, %c0_14] : memref<1x8xf32, #tpu.memory_space<vmem>>, vector<1x8xf32>
    %18 = vector.broadcast %17 : vector<1x8xf32> to vector<256x8xf32>
    %19 = arith.addf %16, %18 : vector<256x8xf32>
    %20 = tpu.transpose %19, [1, 0] : vector<256x8xf32> -> vector<8x256xf32>
    %c0_15 = arith.constant 0 : index
    %c0_16 = arith.constant 0 : index
    %21 = vector.load %arg8[%c0_15, %c0_16] : memref<8x256xf32, #tpu.memory_space<vmem>>, vector<8x256xf32>
    tpu.vector_store %arg8[%c0_15, %c0_16], %20 {strides = array<i32>} : memref<8x256xf32, #tpu.memory_space<vmem>>, vector<8x256xf32>,
    return
  }
  func.func @transform_0(%arg0: i32) -> (i32, i32) {
    %c0_i32 = arith.constant 0 : i32
    %c0_i32_0 = arith.constant 0 : i32
    return %arg0, %c0_i32 : i32, i32
  }
  func.func @transform_1(%arg0: i32) -> (i32, i32) {
    %c0_i32 = arith.constant 0 : i32
    %c0_i32_0 = arith.constant 0 : i32
    %c0_i32_1 = arith.constant 0 : i32
    return %c0_i32, %c0_i32_0 : i32, i32
  }
  func.func @transform_2(%arg0: i32) -> (i32, i32) {
    %c0_i32 = arith.constant 0 : i32
    %c0_i32_0 = arith.constant 0 : i32
    %c0_i32_1 = arith.constant 0 : i32
    return %c0_i32, %c0_i32_0 : i32, i32
  }
  func.func @transform_3(%arg0: i32) -> (i32, i32) {
    %c0_i32 = arith.constant 0 : i32
    %c0_i32_0 = arith.constant 0 : i32
    %c0_i32_1 = arith.constant 0 : i32
    return %c0_i32, %c0_i32_0 : i32, i32
  }
  func.func @transform_4(%arg0: i32) -> (i32, i32) {
    %c0_i32 = arith.constant 0 : i32
    %c0_i32_0 = arith.constant 0 : i32
    %c0_i32_1 = arith.constant 0 : i32
    return %c0_i32, %c0_i32_0 : i32, i32
  }
  func.func @transform_5(%arg0: i32) -> (i32, i32) {
    %c0_i32 = arith.constant 0 : i32
    %c0_i32_0 = arith.constant 0 : i32
    %c0_i32_1 = arith.constant 0 : i32
    return %c0_i32, %c0_i32_0 : i32, i32
  }
  func.func @transform_6(%arg0: i32) -> (i32, i32) {
    %c0_i32 = arith.constant 0 : i32
    %c0_i32_0 = arith.constant 0 : i32
    %c0_i32_1 = arith.constant 0 : i32
    return %c0_i32, %c0_i32_0 : i32, i32
  }
  func.func @transform_7(%arg0: i32) -> (i32, i32) {
    %c0_i32 = arith.constant 0 : i32
    %c0_i32_0 = arith.constant 0 : i32
    return %c0_i32, %arg0 : i32, i32
  }
}

</mosaic_0001>

<bundles_post_ra>
// kernel: tpu_custom_call.1
= control target key start
LH: loop header
LB: loop body
LE: loop exit
PB: predicated region body
PF: predicated region fallthrough
CT: control target
= control target key end

     0   :  { %vm155_vm0 = vcmask 130048   ;;  %s1692_s0 = inlined_call_operand.vmem [shape: bf16[256,16], index: 0, kind: input, shape index: {}]   ;;  %s1693_s1 = inlined_call_operand.vmem [shape: bf16[16,32], index: 1, kind: input, shape index: {}]   ;;  %s1694_s2 = inlined_call_operand.vmem [shape: f32[1,32], index: 2, kind: input, shape index: {}]   ;;  %s1695_s3 = inlined_call_operand.vmem [shape: bf16[32,32], index: 3, kind: input, shape index: {}]   ;;  %s1696_s4 = inlined_call_operand.vmem [shape: f32[1,32], index: 4, kind: input, shape index: {}]   ;;  %s1697_s5 = inlined_call_operand.vmem [shape: bf16[32,8], index: 5, kind: input, shape index: {}]   ;;  %s1698_s6 = inlined_call_operand.vmem [shape: f32[1,8], index: 6, kind: input, shape index: {}]   ;;  %s1699_s7 = inlined_call_operand.hbm [shape: f32[8,256], index: 7, kind: output, shape index: {}]  }
   0x1   :  { %v1240_v0 = vld [vmem:[%s1693_s1] sm:$0xff]   ;;  %v1242_v2 = vld [vmem:[%s1692_s0 + $0x8] sm:$0xff]   ;;  %v1243_v3 = vld [vmem:[%s1692_s0 + $0x10] sm:$0xff]  }
   0x2   :  { %v1241_v1 = vld [vmem:[%s1692_s0] sm:$0xff]   ;;  %1131 = vmatprep.subr.bf16.mxu0 %v1240_v0  ;;  %1237 = vmatprep.subr.bf16.mxu1 %v1240_v0  ;;  %v1244_v4 = vld [vmem:[%s1692_s0 + $0x18] sm:$0xff]   ;;  %v1250_v7 = vld [vmem:[%s1692_s0 + $0x48] sm:$0xff]  }
   0x3   :  { %1132 = vmatpush3.bf16.msra.mxu0 %v1240_v0  ;;  %1133 = vmatprep.mubr.msk.bf16.mxu0 %vm155_vm0, %v1241_v1  ;;  %v1245_v5 = vld [vmem:[%s1692_s0 + $0x20] sm:$0xff]   ;;  %v1251_v8 = vld [vmem:[%s1692_s0 + $0x50] sm:$0xff]   ;;  %v1252_v9 = vld [vmem:[%s1692_s0 + $0x58] sm:$0xff]  }
   0x4   :  { %1238 = vmatpush3.bf16.msra.mxu1 %v1240_v0  ;;  %v1249_v6 = vld [vmem:[%s1692_s0 + $0x40] sm:$0xff]   ;;  %v1246_v10 = vld [vmem:[%s1692_s0 + $0x28] sm:$0xff]   ;;  %v1247_v12 = vld [vmem:[%s1692_s0 + $0x30] sm:$0xff]  }
   0x5   :  { %1149 = vmatprep.mubr.msk.bf16.mxu1 %vm155_vm0, %v1249_v6  ;;  %v1253_v11 = vld [vmem:[%s1692_s0 + $0x60] sm:$0xff]   ;;  %v1257_v13 = vld [vmem:[%s1695_s3 + $0x8] sm:$0xff]  }
   0x6   :  { %1134 = vmatmul.mubr.msk.bf16.vlgmr.msra.gmra.mxu0 %vm155_vm0, %v1242_v2  ;;  %1165 = vmatprep.subr.bf16.mxu1 %v1257_v13 }
   0x7   :  { %1137 = vmatprep.mubr.msk.bf16.mxu0 %vm155_vm0, %v1243_v3  ;;  %1150 = vmatmul.mubr.msk.bf16.vlgmr.msra.gmra.mxu1 %vm155_vm0, %v1250_v7 }
   0x8   :  { %1153 = vmatprep.mubr.msk.bf16.mxu1 %vm155_vm0, %v1251_v8 }
   0xe   :  { %1138 = vmatmul.mubr.msk.bf16.gmra.mxu0 %vm155_vm0, %v1244_v4 }
   0xf   :  { %1141 = vmatprep.mubr.msk.bf16.mxu0 %vm155_vm0, %v1245_v5  ;;  %1154 = vmatmul.mubr.msk.bf16.gmra.mxu1 %vm155_vm0, %v1252_v9 }
  0x10   :  { %12 = vsyncpa [#allocation3], 0  ;;  %1157 = vmatprep.mubr.msk.bf16.mxu1 %vm155_vm0, %v1253_v11  ;;  %1166 = vmatpush3.bf16.msra.mxu1 %v1257_v13  ;;  %v1254_v14 = vld [vmem:[%s1692_s0 + $0x68] sm:$0xff]   ;;  %v1255_v15 = vld [vmem:[%s1692_s0 + $0x70] sm:$0xff]   ;;  %vm436_vm1 = vcmask 261120  }
  0x11   :  { %v1248_v16 = vld [vmem:[%s1692_s0 + $0x38] sm:$0xff]   ;;  %v1258_v18 = vld [vmem:[%s1695_s3] sm:$0xff]   ;;  %v1259_v19 = vld [vmem:[%s1697_s5 + $0x8] sm:$0xff]  }
  0x12   :  { %v1256_v17 = vld [vmem:[%s1692_s0 + $0x78] sm:$0xff]   ;;  %1167 = vmatprep.subr.bf16.mxu1 %v1258_v18  ;;  %1201 = vmatprep.subr.bf16.mxu0 %v1259_v19  ;;  %v1531_v21 = vld [vmem:[%s1694_s2] ss:$0 sm:$0xff] }
  0x13   :  { %1202 = vmatpush3.bf16.msra.mxu0 %v1259_v19 }
  0x14   :  { %1168 = vmatpush3.bf16.msra.mxu1 %v1258_v18 }
  0x16   :  { %1142 = vmatmul.mubr.msk.bf16.gmra.mxu0 %vm155_vm0, %v1246_v10 }
  0x17   :  { %1145 = vmatprep.mubr.msk.bf16.mxu0 %vm155_vm0, %v1247_v12  ;;  %1158 = vmatmul.mubr.msk.bf16.gmra.mxu1 %vm155_vm0, %v1254_v14 }
  0x18   :  { %1161 = vmatprep.mubr.msk.bf16.mxu1 %vm155_vm0, %v1255_v15 }
  0x1e   :  { %1146 = vmatmul.mubr.msk.bf16.gmra.mxu0 %vm155_vm0, %v1248_v16 }
  0x1f   :  { %1162 = vmatmul.mubr.msk.bf16.gmra.mxu1 %vm155_vm0, %v1256_v17 }
  0xc6   :  { %v1135_v20 = vpop.f32.mrf.mxu0 }
  0xc7   :  { %v247_v26 = vadd.f32 %v1135_v20, %v1531_v21  ;;  %v1536_v28 = vpop.f32.mrf.mxu1 }
  0xc8   :  { %v238_v22 = vpop.f32.mrf.mxu0  ;;  %v311_v14 = vadd.f32 %v1536_v28, %v1531_v21 }
  0xc9   :  { %v239_v23 = vadd.f32 %v1531_v21, %v238_v22  ;;  %v302_v31 = vpop.f32.mrf.mxu1 }
  0xca   :  { %v1136_v24 = vpop.f32.mrf.mxu0  ;;  %v303_v61 = vadd.f32 %v1531_v21, %v302_v31 }
  0xcb   :  { %v250_v25 = vadd.f32 %v1136_v24, %v1531_v21  ;;  %1261 = vtanh.f32 %v239_v23  ;;  %v1539_v33 = vpop.f32.mrf.mxu1 }
  0xcc   :  { %v241_v27 = vpop.f32.mrf.mxu0  ;;  %v314_v19 = vadd.f32 %v1539_v33, %v1531_v21 }
  0xcd   :  { %v242_v29 = vadd.f32 %v1531_v21, %v241_v27  ;;  %1263 = vtanh.f32 %v250_v25  ;;  %v305_v36 = vpop.f32.mrf.mxu1 }
  0xce   :  { %v1139_v30 = vpop.f32.mrf.mxu0  ;;  %v306_v63 = vadd.f32 %v1531_v21, %v305_v36 }
  0xcf   :  { %1265 = vtanh.f32 %v242_v29  ;;  %v263_v38 = vadd.f32 %v1139_v30, %v1531_v21  ;;  %v1544_v40 = vpop.f32.mrf.mxu1 }
  0xd0   :  { %1267 = vtanh.f32 %v247_v26  ;;  %v254_v32 = vpop.f32.mrf.mxu0  ;;  %v327_v26 = vadd.f32 %v1544_v40, %v1531_v21 }
  0xd1   :  { %v255_v34 = vadd.f32 %v1531_v21, %v254_v32  ;;  %v318_v43 = vpop.f32.mrf.mxu1 }
  0xd2   :  { %v1140_v35 = vpop.f32.mrf.mxu0  ;;  %v319_v15 = vadd.f32 %v1531_v21, %v318_v43 }
  0xd3   :  { %v266_v37 = vadd.f32 %v1140_v35, %v1531_v21  ;;  %1269 = vtanh.f32 %v255_v34  ;;  %v1547_v45 = vpop.f32.mrf.mxu1 }
  0xd4   :  { %v257_v39 = vpop.f32.mrf.mxu0  ;;  %v330_v29 = vadd.f32 %v1547_v45, %v1531_v21 }
  0xd5   :  { %v258_v41 = vadd.f32 %v1531_v21, %v257_v39  ;;  %1271 = vtanh.f32 %v266_v37  ;;  %v321_v49 = vpop.f32.mrf.mxu1 }
  0xd6   :  { %v1143_v42 = vpop.f32.mrf.mxu0  ;;  %v322_v17 = vadd.f32 %v1531_v21, %v321_v49 }
  0xd7   :  { %1273 = vtanh.f32 %v258_v41  ;;  %v279_v53 = vadd.f32 %v1143_v42, %v1531_v21  ;;  %v1552_v55 = vpop.f32.mrf.mxu1 }
  0xd8   :  { %1275 = vtanh.f32 %v263_v38  ;;  %v270_v44 = vpop.f32.mrf.mxu0  ;;  %v1262_v47 = vpop.eup %1261  ;;  %v343_v41 = vadd.f32 %v1552_v55, %v1531_v21 }
  0xd9   :  { %v271_v46 = vadd.f32 %v1531_v21, %v270_v44  ;;  %v334_v0 = vpop.f32.mrf.mxu1 }
  0xda   :  { %v1144_v48 = vpop.f32.mrf.mxu0  ;;  %v1264_v50 = vpop.eup %1263  ;;  %v335_v31 = vadd.f32 %v1531_v21, %v334_v0 }
  0xdb   :  { %v282_v51 = vadd.f32 %v1144_v48, %v1531_v21  ;;  %1277 = vtanh.f32 %v271_v46  ;;  %v1160_v9 = vpop.f32.mrf.mxu1 }
  0xdc   :  { %v1266_v52 = vpop.eup %1265  ;;  %v273_v54 = vpop.f32.mrf.mxu0  ;;  %v346_v44 = vadd.f32 %v1160_v9, %v1531_v21 }
  0xdd   :  { %v1268_v56 = vpop.eup %1267  ;;  %v274_v57 = vadd.f32 %v1531_v21, %v273_v54  ;;  %v397_v58 = vpack.c.bf16 %v1266_v52, %v1262_v47  ;;  %1279 = vtanh.f32 %v282_v51  ;;  %v337_v16 = vpop.f32.mrf.mxu1 }
  0xde   :  { %v398_v59 = vpack.c.bf16 %v1264_v50, %v1268_v56  ;;  %v1147_v60 = vpop.f32.mrf.mxu0  ;;  %v338_v33 = vadd.f32 %v1531_v21, %v337_v16 }
  0xdf   :  { %1281 = vtanh.f32 %v274_v57  ;;  %1169 = vmatprep.mubr.msk.bf16.mxu1 %vm436_vm1, %v397_v58  ;;  %v295_v7 = vadd.f32 %v1147_v60, %v1531_v21  ;;  %v1163_v20 = vpop.f32.mrf.mxu1 }
  0xe0   :  { %1283 = vtanh.f32 %v279_v53  ;;  %v286_v62 = vpop.f32.mrf.mxu0  ;;  %1170 = vmatmul.mubr.msk.bf16.vlgmr.msra.gmra.mxu1 %vm436_vm1, %v398_v59  ;;  %v1270_v2 = vpop.eup %1269  ;;  %v359_v54 = vadd.f32 %v1163_v20, %v1531_v21 }
  0xe1   :  { %v287_v1 = vadd.f32 %v1531_v21, %v286_v62  ;;  %1285 = vtanh.f32 %v303_v61  ;;  %v350_v28 = vpop.f32.mrf.mxu1 }
  0xe2   :  { %v1148_v3 = vpop.f32.mrf.mxu0  ;;  %v1272_v4 = vpop.eup %1271  ;;  %1287 = vtanh.f32 %v306_v63  ;;  %v351_v46 = vadd.f32 %v1531_v21, %v350_v28 }
  0xe3   :  { %v298_v5 = vadd.f32 %v1148_v3, %v1531_v21  ;;  %1289 = vtanh.f32 %v287_v1  ;;  %v1164_v35 = vpop.f32.mrf.mxu1 }
  0xe4   :  { %v1274_v6 = vpop.eup %1273  ;;  %v289_v8 = vpop.f32.mrf.mxu0  ;;  %v362_v56 = vadd.f32 %v1164_v35, %v1531_v21 }
  0xe5   :  { %v1276_v10 = vpop.eup %1275  ;;  %v290_v11 = vadd.f32 %v1531_v21, %v289_v8  ;;  %v399_v12 = vpack.c.bf16 %v1274_v6, %v1270_v2  ;;  %1291 = vtanh.f32 %v298_v5  ;;  %v353_v43 = vpop.f32.mrf.mxu1  ;;  %v1260_v5 = vld [vmem:[%s1697_s5] sm:$0xff]  }
  0xe6   :  { %v400_v13 = vpack.c.bf16 %v1272_v4, %v1276_v10  ;;  %v354_v48 = vadd.f32 %v1531_v21, %v353_v43  ;;  %1203 = vmatprep.subr.bf16.mxu0 %v1260_v5 }
  0xe7   :  { %1293 = vtanh.f32 %v290_v11  ;;  %1173 = vmatprep.mubr.msk.bf16.mxu1 %vm436_vm1, %v399_v12  ;;  %1204 = vmatpush3.bf16.msra.mxu0 %v1260_v5 }
  0xe8   :  { %1295 = vtanh.f32 %v295_v7  ;;  %1174 = vmatmul.mubr.msk.bf16.gmra.mxu1 %vm436_vm1, %v400_v13  ;;  %v1278_v18 = vpop.eup %1277  ;;  %v1602_v7 = vld [vmem:[%s1696_s4] ss:$0 sm:$0xff] }
  0xe9   :  { %1297 = vtanh.f32 %v311_v14 }
  0xea   :  { %v1280_v22 = vpop.eup %1279  ;;  %1299 = vtanh.f32 %v319_v15 }
  0xeb   :  { %1301 = vtanh.f32 %v322_v17 }
  0xec   :  { %v1282_v23 = vpop.eup %1281  ;;  %1303 = vtanh.f32 %v314_v19 }
  0xed   :  { %v1284_v24 = vpop.eup %1283  ;;  %v401_v25 = vpack.c.bf16 %v1282_v23, %v1278_v18  ;;  %1305 = vtanh.f32 %v327_v26 }
  0xee   :  { %v402_v27 = vpack.c.bf16 %v1280_v22, %v1284_v24  ;;  %v1286_v30 = vpop.eup %1285  ;;  %1307 = vtanh.f32 %v330_v29 }
  0xef   :  { %1177 = vmatprep.mubr.msk.bf16.mxu1 %vm436_vm1, %v401_v25  ;;  %v1288_v32 = vpop.eup %1287  ;;  %1309 = vtanh.f32 %v335_v31 }
  0xf0   :  { %1178 = vmatmul.mubr.msk.bf16.gmra.mxu1 %vm436_vm1, %v402_v27  ;;  %v1290_v34 = vpop.eup %1289  ;;  %v405_v40 = vpack.c.bf16 %v1288_v32, %v1286_v30  ;;  %1311 = vtanh.f32 %v338_v33 }
  0xf1   :  { %1313 = vtanh.f32 %v343_v41 }
  0xf2   :  { %v1292_v36 = vpop.eup %1291  ;;  %1315 = vtanh.f32 %v346_v44 }
  0xf3   :  { %1317 = vtanh.f32 %v351_v46 }
  0xf4   :  { %v1294_v37 = vpop.eup %1293  ;;  %1319 = vtanh.f32 %v354_v48 }
  0xf5   :  { %v1296_v38 = vpop.eup %1295  ;;  %v403_v39 = vpack.c.bf16 %v1294_v37, %v1290_v34  ;;  %1321 = vtanh.f32 %v359_v54 }
  0xf6   :  { %v404_v42 = vpack.c.bf16 %v1292_v36, %v1296_v38  ;;  %v1298_v45 = vpop.eup %1297  ;;  %1323 = vtanh.f32 %v362_v56 }
  0xf7   :  { %1181 = vmatprep.mubr.msk.bf16.mxu1 %vm436_vm1, %v403_v39  ;;  %v1300_v47 = vpop.eup %1299 }
  0xf8   :  { %1182 = vmatmul.mubr.msk.bf16.gmra.mxu1 %vm436_vm1, %v404_v42  ;;  %v1302_v49 = vpop.eup %1301 }
  0xf9   :  { %1185 = vmatprep.mubr.msk.bf16.mxu1 %vm436_vm1, %v405_v40  ;;  %v1304_v50 = vpop.eup %1303  ;;  %v407_v51 = vpack.c.bf16 %v1302_v49, %v1300_v47 }
  0xfa   :  { %v406_v52 = vpack.c.bf16 %v1304_v50, %v1298_v45  ;;  %v1306_v53 = vpop.eup %1305 }
  0xfb   :  { %v1308_v55 = vpop.eup %1307 }
  0xfc   :  { %v1310_v57 = vpop.eup %1309  ;;  %v408_v59 = vpack.c.bf16 %v1308_v55, %v1306_v53 }
  0xfd   :  { %v1312_v58 = vpop.eup %1311 }
  0xfe   :  { %v409_v60 = vpack.c.bf16 %v1312_v58, %v1310_v57  ;;  %v1314_v61 = vpop.eup %1313 }
  0xff   :  { %v1316_v62 = vpop.eup %1315 }
 0x100   :  { %1186 = vmatmul.mubr.msk.bf16.gmra.mxu1 %vm436_vm1, %v406_v52  ;;  %v1318_v63 = vpop.eup %1317  ;;  %v410_v1 = vpack.c.bf16 %v1316_v62, %v1314_v61 }
 0x101   :  { %1189 = vmatprep.mubr.msk.bf16.mxu1 %vm436_vm1, %v407_v51  ;;  %v1320_v0 = vpop.eup %1319 }
 0x102   :  { %v411_v2 = vpack.c.bf16 %v1320_v0, %v1318_v63  ;;  %v1322_v3 = vpop.eup %1321 }
 0x103   :  { %v1324_v21 = vpop.eup %1323 }
 0x104   :  { %v412_v4 = vpack.c.bf16 %v1324_v21, %v1322_v3 }
 0x108   :  { %1190 = vmatmul.mubr.msk.bf16.gmra.mxu1 %vm436_vm1, %v408_v59 }
 0x109   :  { %1193 = vmatprep.mubr.msk.bf16.mxu1 %vm436_vm1, %v409_v60 }
 0x110   :  { %1194 = vmatmul.mubr.msk.bf16.gmra.mxu1 %vm436_vm1, %v410_v1 }
 0x111   :  { %1197 = vmatprep.mubr.msk.bf16.mxu1 %vm436_vm1, %v411_v2 }
 0x118   :  { %1198 = vmatmul.mubr.msk.bf16.gmra.mxu1 %vm436_vm1, %v412_v4 }
 0x1a0   :  { %v1171_v6 = vpop.f32.mrf.mxu1 }
 0x1a1   :  { %v528_v12 = vadd.f32 %v1171_v6, %v1602_v7 }
 0x1a2   :  { %v519_v8 = vpop.f32.mrf.mxu1 }
 0x1a3   :  { %v520_v9 = vadd.f32 %v1602_v7, %v519_v8 }
 0x1a4   :  { %v1172_v10 = vpop.f32.mrf.mxu1 }
 0x1a5   :  { %v531_v11 = vadd.f32 %v1172_v10, %v1602_v7  ;;  %1325 = vtanh.f32 %v520_v9 }
 0x1a6   :  { %v522_v13 = vpop.f32.mrf.mxu1 }
 0x1a7   :  { %v523_v14 = vadd.f32 %v1602_v7, %v522_v13  ;;  %1327 = vtanh.f32 %v531_v11 }
 0x1a8   :  { %v1175_v15 = vpop.f32.mrf.mxu1 }
 0x1a9   :  { %1329 = vtanh.f32 %v523_v14  ;;  %v544_v20 = vadd.f32 %v1175_v15, %v1602_v7 }
 0x1aa   :  { %1331 = vtanh.f32 %v528_v12  ;;  %v535_v16 = vpop.f32.mrf.mxu1 }
 0x1ab   :  { %v536_v17 = vadd.f32 %v1602_v7, %v535_v16 }
 0x1ac   :  { %v1176_v18 = vpop.f32.mrf.mxu1 }
 0x1ad   :  { %v547_v19 = vadd.f32 %v1176_v18, %v1602_v7  ;;  %1333 = vtanh.f32 %v536_v17 }
 0x1ae   :  { %v538_v22 = vpop.f32.mrf.mxu1 }
 0x1af   :  { %v539_v23 = vadd.f32 %v1602_v7, %v538_v22  ;;  %1335 = vtanh.f32 %v547_v19 }
 0x1b0   :  { %v1179_v24 = vpop.f32.mrf.mxu1 }
 0x1b1   :  { %1337 = vtanh.f32 %v539_v23  ;;  %v560_v32 = vadd.f32 %v1179_v24, %v1602_v7 }
 0x1b2   :  { %1339 = vtanh.f32 %v544_v20  ;;  %v551_v25 = vpop.f32.mrf.mxu1  ;;  %v1326_v27 = vpop.eup %1325 }
 0x1b3   :  { %v552_v26 = vadd.f32 %v1602_v7, %v551_v25 }
 0x1b4   :  { %v1180_v28 = vpop.f32.mrf.mxu1  ;;  %v1328_v29 = vpop.eup %1327 }
 0x1b5   :  { %v563_v30 = vadd.f32 %v1180_v28, %v1602_v7  ;;  %1341 = vtanh.f32 %v552_v26 }
 0x1b6   :  { %v1330_v31 = vpop.eup %1329  ;;  %v554_v33 = vpop.f32.mrf.mxu1 }
 0x1b7   :  { %v1332_v34 = vpop.eup %1331  ;;  %v555_v35 = vadd.f32 %v1602_v7, %v554_v33  ;;  %v678_v36 = vpack.c.bf16 %v1330_v31, %v1326_v27  ;;  %1343 = vtanh.f32 %v563_v30 }
 0x1b8   :  { %v679_v37 = vpack.c.bf16 %v1328_v29, %v1332_v34  ;;  %v1183_v38 = vpop.f32.mrf.mxu1 }
 0x1b9   :  { %1345 = vtanh.f32 %v555_v35  ;;  %1205 = vmatprep.mubr.msk.bf16.mxu0 %vm436_vm1, %v678_v36  ;;  %v576_v46 = vadd.f32 %v1183_v38, %v1602_v7 }
 0x1ba   :  { %1347 = vtanh.f32 %v560_v32  ;;  %v567_v39 = vpop.f32.mrf.mxu1  ;;  %1206 = vmatmul.mubr.msk.bf16.vlgmr.msra.gmra.mxu0 %vm436_vm1, %v679_v37  ;;  %v1334_v41 = vpop.eup %1333 }
 0x1bb   :  { %v568_v40 = vadd.f32 %v1602_v7, %v567_v39 }
 0x1bc   :  { %v1184_v42 = vpop.f32.mrf.mxu1  ;;  %v1336_v43 = vpop.eup %1335 }
 0x1bd   :  { %v579_v44 = vadd.f32 %v1184_v42, %v1602_v7  ;;  %1349 = vtanh.f32 %v568_v40 }
 0x1be   :  { %v1338_v45 = vpop.eup %1337  ;;  %v570_v47 = vpop.f32.mrf.mxu1 }
 0x1bf   :  { %v1340_v48 = vpop.eup %1339  ;;  %v571_v49 = vadd.f32 %v1602_v7, %v570_v47  ;;  %v680_v50 = vpack.c.bf16 %v1338_v45, %v1334_v41  ;;  %1351 = vtanh.f32 %v579_v44 }
 0x1c0   :  { %v1187_v51 = vpop.f32.mrf.mxu1  ;;  %v681_v52 = vpack.c.bf16 %v1336_v43, %v1340_v48 }
 0x1c1   :  { %1353 = vtanh.f32 %v571_v49  ;;  %1209 = vmatprep.mubr.msk.bf16.mxu0 %vm436_vm1, %v680_v50  ;;  %v592_v60 = vadd.f32 %v1187_v51, %v1602_v7 }
 0x1c2   :  { %1355 = vtanh.f32 %v576_v46  ;;  %v583_v53 = vpop.f32.mrf.mxu1  ;;  %1210 = vmatmul.mubr.msk.bf16.gmra.mxu0 %vm436_vm1, %v681_v52  ;;  %v1342_v55 = vpop.eup %1341 }
 0x1c3   :  { %v584_v54 = vadd.f32 %v1602_v7, %v583_v53 }
 0x1c4   :  { %v1188_v56 = vpop.f32.mrf.mxu1  ;;  %v1344_v57 = vpop.eup %1343 }
 0x1c5   :  { %v595_v58 = vadd.f32 %v1188_v56, %v1602_v7  ;;  %1357 = vtanh.f32 %v584_v54 }
 0x1c6   :  { %v1346_v59 = vpop.eup %1345  ;;  %v586_v61 = vpop.f32.mrf.mxu1 }
 0x1c7   :  { %v1348_v62 = vpop.eup %1347  ;;  %v587_v63 = vadd.f32 %v1602_v7, %v586_v61  ;;  %v682_v0 = vpack.c.bf16 %v1346_v59, %v1342_v55  ;;  %1359 = vtanh.f32 %v595_v58 }
 0x1c8   :  { %v1191_v1 = vpop.f32.mrf.mxu1  ;;  %v683_v2 = vpack.c.bf16 %v1344_v57, %v1348_v62  ;;  %v1655_v57 = vld [vmem:[%s1698_s6] ss:$0 sm:$0xff]  ;;  %s1411_s6 = smov [#allocation2]  }
 0x1c9   :  { %1361 = vtanh.f32 %v587_v63  ;;  %1213 = vmatprep.mubr.msk.bf16.mxu0 %vm436_vm1, %v682_v0  ;;  %v608_v10 = vadd.f32 %v1191_v1, %v1602_v7  ;;  %s998_s19 = sshll.u32 %s1411_s6, 4  ;;  %s999_s19 = int_to_ptr.vmem [resolvable:$true] %s998_s19 }
 0x1ca   :  { %1363 = vtanh.f32 %v592_v60  ;;  %v599_v3 = vpop.f32.mrf.mxu1  ;;  %1214 = vmatmul.mubr.msk.bf16.gmra.mxu0 %vm436_vm1, %v683_v2  ;;  %v1350_v4 = vpop.eup %1349  ;;  %s1389_s20 = scalar_lea.vmem %s999_s19, 256  ;;  %p1394_p1 = scmp.lt.s32.totalorder %s999_s19, %s999_s19 }
 0x1cb   :  { %v600_v21 = vadd.f32 %v1602_v7, %v599_v3  ;;  %p1390_p0 = scmp.ne.s32.totalorder %s999_s19, %s1389_s20  ;;  %p1395_p2 = scmp.lt.s32.totalorder %s1389_s20, %s1389_s20 }
 0x1cc   :  { %v1192_v5 = vpop.f32.mrf.mxu1  ;;  %v1352_v6 = vpop.eup %1351 }
 0x1cd   :  { %v611_v8 = vadd.f32 %v1192_v5, %v1602_v7  ;;  %1365 = vtanh.f32 %v600_v21  ;;  %p1396_p3 = por %p1395_p2, %p1394_p1 }
 0x1ce   :  { %v1354_v9 = vpop.eup %1353  ;;  %v602_v11 = vpop.f32.mrf.mxu1 }
 0x1cf   :  { %v1356_v12 = vpop.eup %1355  ;;  %v603_v13 = vadd.f32 %v1602_v7, %v602_v11  ;;  %v684_v14 = vpack.c.bf16 %v1354_v9, %v1350_v4  ;;  %1367 = vtanh.f32 %v611_v8  ;;  %p1397_p4 = pnand %p1396_p3, %p1390_p0 }
 0x1d0   :  { %v1195_v15 = vpop.f32.mrf.mxu1  ;;  %v685_v16 = vpack.c.bf16 %v1352_v6, %v1356_v12 }
 0x1d1   :  { %1369 = vtanh.f32 %v603_v13  ;;  %v624_v17 = vadd.f32 %v1195_v15, %v1602_v7  ;;  %1217 = vmatprep.mubr.msk.bf16.mxu0 %vm436_vm1, %v684_v14 }
 0x1d2   :  { %1371 = vtanh.f32 %v608_v10  ;;  %v615_v18 = vpop.f32.mrf.mxu1  ;;  %1218 = vmatmul.mubr.msk.bf16.gmra.mxu0 %vm436_vm1, %v685_v16  ;;  %v1358_v20 = vpop.eup %1357 }
 0x1d3   :  { %v616_v19 = vadd.f32 %v1602_v7, %v615_v18  ;;  %1373 = vtanh.f32 %v624_v17 }
 0x1d4   :  { %v1196_v22 = vpop.f32.mrf.mxu1  ;;  %v1360_v23 = vpop.eup %1359 }
 0x1d5   :  { %v627_v24 = vadd.f32 %v1196_v22, %v1602_v7  ;;  %1375 = vtanh.f32 %v616_v19 }
 0x1d6   :  { %v1362_v25 = vpop.eup %1361  ;;  %v618_v26 = vpop.f32.mrf.mxu1 }
 0x1d7   :  { %v1364_v27 = vpop.eup %1363  ;;  %1377 = vtanh.f32 %v627_v24  ;;  %v619_v28 = vadd.f32 %v1602_v7, %v618_v26  ;;  %v686_v29 = vpack.c.bf16 %v1362_v25, %v1358_v20 }
 0x1d8   :  { %v687_v30 = vpack.c.bf16 %v1360_v23, %v1364_v27  ;;  %v1199_v31 = vpop.f32.mrf.mxu1 }
 0x1d9   :  { %1379 = vtanh.f32 %v619_v28  ;;  %1221 = vmatprep.mubr.msk.bf16.mxu0 %vm436_vm1, %v686_v29  ;;  %v640_v32 = vadd.f32 %v1199_v31, %v1602_v7 }
 0x1da   :  { %1222 = vmatmul.mubr.msk.bf16.gmra.mxu0 %vm436_vm1, %v687_v30  ;;  %v631_v33 = vpop.f32.mrf.mxu1  ;;  %v1366_v35 = vpop.eup %1365 }
 0x1db   :  { %v632_v34 = vadd.f32 %v1602_v7, %v631_v33  ;;  %1381 = vtanh.f32 %v640_v32 }
 0x1dc   :  { %v1200_v36 = vpop.f32.mrf.mxu1  ;;  %v1368_v37 = vpop.eup %1367 }
 0x1dd   :  { %v643_v38 = vadd.f32 %v1200_v36, %v1602_v7  ;;  %1383 = vtanh.f32 %v632_v34 }
 0x1de   :  { %v1370_v39 = vpop.eup %1369  ;;  %v634_v40 = vpop.f32.mrf.mxu1 }
 0x1df   :  { %v1372_v41 = vpop.eup %1371  ;;  %1385 = vtanh.f32 %v643_v38  ;;  %v688_v42 = vpack.c.bf16 %v1370_v39, %v1366_v35  ;;  %v635_v43 = vadd.f32 %v1602_v7, %v634_v40 }
 0x1e0   :  { %v689_v44 = vpack.c.bf16 %v1368_v37, %v1372_v41  ;;  %v1374_v45 = vpop.eup %1373 }
 0x1e1   :  { %1225 = vmatprep.mubr.msk.bf16.mxu0 %vm436_vm1, %v688_v42  ;;  %1387 = vtanh.f32 %v635_v43 }
 0x1e2   :  { %1226 = vmatmul.mubr.msk.bf16.gmra.mxu0 %vm436_vm1, %v689_v44  ;;  %v1376_v46 = vpop.eup %1375 }
 0x1e4   :  { %v1378_v47 = vpop.eup %1377 }
 0x1e5   :  { %v691_v49 = vpack.c.bf16 %v1378_v47, %v1374_v45 }
 0x1e6   :  { %v1380_v48 = vpop.eup %1379 }
 0x1e7   :  { %v690_v50 = vpack.c.bf16 %v1380_v48, %v1376_v46 }
 0x1e8   :  { %v1382_v51 = vpop.eup %1381 }
 0x1e9   :  { %1229 = vmatprep.mubr.msk.bf16.mxu0 %vm436_vm1, %v690_v50 }
 0x1ea   :  { %1230 = vmatmul.mubr.msk.bf16.gmra.mxu0 %vm436_vm1, %v691_v49  ;;  %v1384_v52 = vpop.eup %1383 }
 0x1ec   :  { %v1386_v53 = vpop.eup %1385 }
 0x1ed   :  { %v693_v54 = vpack.c.bf16 %v1386_v53, %v1382_v51 }
 0x1ee   :  { %v1388_v7 = vpop.eup %1387 }
 0x1ef   :  { %v692_v55 = vpack.c.bf16 %v1388_v7, %v1384_v52 }
 0x1f1   :  { %1233 = vmatprep.mubr.msk.bf16.mxu0 %vm436_vm1, %v692_v55 }
 0x1f2   :  { %1234 = vmatmul.mubr.msk.bf16.gmra.mxu0 %vm436_vm1, %v693_v54 }
 0x27a   :  { %v1207_v56 = vpop.f32.mrf.mxu0 }
 0x27b   :  { %v808_v1 = vadd.f32 %v1207_v56, %v1655_v57 }
 0x27c   :  { %v799_v58 = vpop.f32.mrf.mxu0 }
 0x27d   :  { %v800_v59 = vadd.f32 %v1655_v57, %v799_v58 }
 0x27e   :  { %v1208_v60 = vpop.f32.mrf.mxu0 }
 0x27f   :  { %926 = vxpose.xlu0.b32.start [1/16] (narrow) %v800_v59, 8  ;;  %v811_v21 = vadd.f32 %v1208_v60, %v1655_v57 }
 0x280   :  { %v802_v61 = vpop.f32.mrf.mxu0 }
 0x281   :  { %v803_v62 = vadd.f32 %v1655_v57, %v802_v61 }
 0x282   :  { %v1211_v63 = vpop.f32.mrf.mxu0 }
 0x283   :  { %927 = vxpose.xlu0.b32.cont [2/16] (narrow) %v803_v62, 8  ;;  %v824_v13 = vadd.f32 %v1211_v63, %v1655_v57 }
 0x284   :  { %v815_v0 = vpop.f32.mrf.mxu0 }
 0x285   :  { %v816_v6 = vadd.f32 %v1655_v57, %v815_v0 }
 0x286   :  { %v1212_v2 = vpop.f32.mrf.mxu0 }
 0x287   :  { %928 = vxpose.xlu0.b32.cont [3/16] (narrow) %v808_v1, 8  ;;  %v827_v16 = vadd.f32 %v1212_v2, %v1655_v57 }
 0x288   :  { %v818_v3 = vpop.f32.mrf.mxu0 }
 0x289   :  { %v819_v10 = vadd.f32 %v1655_v57, %v818_v3 }
 0x28a   :  { %v1215_v4 = vpop.f32.mrf.mxu0 }
 0x28b   :  { %929 = vxpose.xlu0.b32.cont [4/16] (narrow) %v811_v21, 8  ;;  %v840_v27 = vadd.f32 %v1215_v4, %v1655_v57 }
 0x28c   :  { %v831_v5 = vpop.f32.mrf.mxu0 }
 0x28d   :  { %v832_v19 = vadd.f32 %v1655_v57, %v831_v5 }
 0x28e   :  { %v1216_v8 = vpop.f32.mrf.mxu0 }
 0x28f   :  { %930 = vxpose.xlu0.b32.cont [5/16] (narrow) %v816_v6, 8  ;;  %v843_v30 = vadd.f32 %v1216_v8, %v1655_v57 }
 0x290   :  { %v834_v9 = vpop.f32.mrf.mxu0 }
 0x291   :  { %v835_v24 = vadd.f32 %v1655_v57, %v834_v9 }
 0x292   :  { %v1219_v11 = vpop.f32.mrf.mxu0 }
 0x293   :  { %931 = vxpose.xlu0.b32.cont [6/16] (narrow) %v819_v10, 8  ;;  %v856_v39 = vadd.f32 %v1219_v11, %v1655_v57 }
 0x294   :  { %v847_v12 = vpop.f32.mrf.mxu0 }
 0x295   :  { %v848_v33 = vadd.f32 %v1655_v57, %v847_v12 }
 0x296   :  { %v1220_v14 = vpop.f32.mrf.mxu0 }
 0x297   :  { %932 = vxpose.xlu0.b32.cont [7/16] (narrow) %v824_v13, 8  ;;  %v859_v42 = vadd.f32 %v1220_v14, %v1655_v57 }
 0x298   :  { %v850_v15 = vpop.f32.mrf.mxu0 }
 0x299   :  { %v851_v36 = vadd.f32 %v1655_v57, %v850_v15 }
 0x29a   :  { %v1223_v17 = vpop.f32.mrf.mxu0 }
 0x29b   :  { %933 = vxpose.xlu0.b32.cont [8/16] (narrow) %v827_v16, 8  ;;  %v872_v28 = vadd.f32 %v1223_v17, %v1655_v57 }
 0x29c   :  { %v863_v18 = vpop.f32.mrf.mxu0 }
 0x29d   :  { %v864_v20 = vadd.f32 %v1655_v57, %v863_v18 }
 0x29e   :  { %v1224_v22 = vpop.f32.mrf.mxu0 }
 0x29f   :  { %958 = vxpose.xlu1.b32.start [1/16] (narrow) %v864_v20, 8  ;;  %934 = vxpose.xlu0.b32.cont [9/16] (narrow) %v832_v19, 8  ;;  %v875_v31 = vadd.f32 %v1224_v22, %v1655_v57 }
 0x2a0   :  { %v866_v23 = vpop.f32.mrf.mxu0 }
 0x2a1   :  { %v867_v25 = vadd.f32 %v1655_v57, %v866_v23 }
 0x2a2   :  { %v1227_v26 = vpop.f32.mrf.mxu0 }
 0x2a3   :  { %959 = vxpose.xlu1.b32.cont [2/16] (narrow) %v867_v25, 8  ;;  %935 = vxpose.xlu0.b32.cont [10/16] (narrow) %v835_v24, 8  ;;  %v888_v40 = vadd.f32 %v1227_v26, %v1655_v57 }
 0x2a4   :  { %v879_v29 = vpop.f32.mrf.mxu0 }
 0x2a5   :  { %v880_v34 = vadd.f32 %v1655_v57, %v879_v29 }
 0x2a6   :  { %v1228_v32 = vpop.f32.mrf.mxu0 }
 0x2a7   :  { %960 = vxpose.xlu1.b32.cont [3/16] (narrow) %v872_v28, 8  ;;  %936 = vxpose.xlu0.b32.cont [11/16] (narrow) %v840_v27, 8  ;;  %v891_v43 = vadd.f32 %v1228_v32, %v1655_v57 }
 0x2a8   :  { %v882_v35 = vpop.f32.mrf.mxu0 }
 0x2a9   :  { %v883_v37 = vadd.f32 %v1655_v57, %v882_v35 }
 0x2aa   :  { %v1231_v38 = vpop.f32.mrf.mxu0 }
 0x2ab   :  { %961 = vxpose.xlu1.b32.cont [4/16] (narrow) %v875_v31, 8  ;;  %937 = vxpose.xlu0.b32.cont [12/16] (narrow) %v843_v30, 8  ;;  %v904_v49 = vadd.f32 %v1231_v38, %v1655_v57 }
 0x2ac   :  { %v895_v41 = vpop.f32.mrf.mxu0 }
 0x2ad   :  { %v896_v45 = vadd.f32 %v1655_v57, %v895_v41 }
 0x2ae   :  { %v1232_v44 = vpop.f32.mrf.mxu0 }
 0x2af   :  { %962 = vxpose.xlu1.b32.cont [5/16] (narrow) %v880_v34, 8  ;;  %938 = vxpose.xlu0.b32.cont [13/16] (narrow) %v848_v33, 8  ;;  %v907_v51 = vadd.f32 %v1232_v44, %v1655_v57 }
 0x2b0   :  { %v898_v46 = vpop.f32.mrf.mxu0 }
 0x2b1   :  { %v899_v47 = vadd.f32 %v1655_v57, %v898_v46 }
 0x2b2   :  { %v1235_v48 = vpop.f32.mrf.mxu0 }
 0x2b3   :  { %963 = vxpose.xlu1.b32.cont [6/16] (narrow) %v883_v37, 8  ;;  %939 = vxpose.xlu0.b32.cont [14/16] (narrow) %v851_v36, 8  ;;  %v920_v55 = vadd.f32 %v1235_v48, %v1655_v57 }
 0x2b4   :  { %v911_v50 = vpop.f32.mrf.mxu0 }
 0x2b5   :  { %v912_v53 = vadd.f32 %v1655_v57, %v911_v50 }
 0x2b6   :  { %v1236_v52 = vpop.f32.mrf.mxu0 }
 0x2b7   :  { %964 = vxpose.xlu1.b32.cont [7/16] (narrow) %v888_v40, 8  ;;  %940 = vxpose.xlu0.b32.cont [15/16] (narrow) %v856_v39, 8  ;;  %v923_v56 = vadd.f32 %v1236_v52, %v1655_v57 }
 0x2b8   :  { %v914_v7 = vpop.f32.mrf.mxu0 }
 0x2b9   :  { %v915_v54 = vadd.f32 %v1655_v57, %v914_v7 }
 0x2bb   :  { %965 = vxpose.xlu1.b32.cont [8/16] (narrow) %v891_v43, 8  ;;  %941 = vxpose.xlu0.b32.end [16/16] (narrow) %v859_v42, 8 }
 0x2bf   :  { %966 = vxpose.xlu1.b32.cont [9/16] (narrow) %v896_v45, 8 }
 0x2c3   :  { %967 = vxpose.xlu1.b32.cont [10/16] (narrow) %v899_v47, 8 }
 0x2c7   :  { %968 = vxpose.xlu1.b32.cont [11/16] (narrow) %v904_v49, 8 }
 0x2cb   :  { %969 = vxpose.xlu1.b32.cont [12/16] (narrow) %v907_v51, 8 }
 0x2cf   :  { %970 = vxpose.xlu1.b32.cont [13/16] (narrow) %v912_v53, 8 }
 0x2d3   :  { %971 = vxpose.xlu1.b32.cont [14/16] (narrow) %v915_v54, 8 }
 0x2d7   :  { %972 = vxpose.xlu1.b32.cont [15/16] (narrow) %v920_v55, 8 }
 0x2db   :  { %973 = vxpose.xlu1.b32.end [16/16] (narrow) %v923_v56, 8 }
 0x2fb   :  { %v942_v58 = vpop.trf.xlu0 }
 0x2fc   :  { %990 = vst [vmem:[#allocation2] sm:$0xff] %v942_v58 }
 0x31b   :  { %v974_v59 = vpop.trf.xlu1 }
 0x31c   :  { %991 = vst [vmem:[#allocation2 + $0x8] sm:$0xff] %v974_v59 }
 0x31d   :  { %1400 = shalt.err (!%p1397_p4)
}
 0x31e   :  { %1001 = dma.vmem_to_hbm [thread:$0]  %s999_s19, 256, %s1699_s7, [#allocation3]  }
 0x31f   :  { %1409 = dma.done.wait [#allocation3], 256  }
 0x320   :  { %1410 = vsyncadd [#allocation3], 4294967040 }
 0x321   :  { %1005 = vsyncpa [#allocation3], 1 }

</bundles_post_ra>
